<compile_context>
chip_gen: v6e
topology: v6e:2x2x1
jax: 0.10.0
libtpu: 0.0.40
codegen_flags: <defaults>
</compile_context>

<pallas_src>
import functools

import jax
import jax.numpy as jnp
from jax import lax
from jax.experimental import pallas as pl
from jax.experimental.pallas import tpu as pltpu


def _poolformer_kernel(inv_ref, col_ref, row_ref, x_ref, o_ref, *, ks: int, W: int):
    """x_ref / o_ref: (Mt, L) block -- one image per row, pixels packed on lanes.

    inv_ref / col_ref / row_ref: (1, L) resident constants
      (1 / valid-tap-count, column index, row index of every flattened pixel).
    """
    p = ks // 2
    xf = x_ref[...].astype(jnp.float32)          # (Mt, L)
    inv = inv_ref[...]                           # (1, L)
    col = col_ref[...]                           # (1, L)
    row = row_ref[...]                           # (1, L)
    L = xf.shape[-1]

    def add_taps(acc, base, lane_shift, dcol, drow):
        # Adds base[l +/- lane_shift] wherever that source pixel really is the
        # (row +/- drow, col +/- dcol) neighbour inside the same image.  The mask
        # is derived from rolled index vectors, so it is independent of the roll
        # direction convention and zero-pads image borders automatically.
        out = acc
        for s in (lane_shift, -lane_shift):
            s = s % L                            # canonical non-negative shift
            xs = pltpu.roll(base, s, axis=1)     # (Mt, L) slab roll (XLU)
            cs = pltpu.roll(col, s, axis=1)      # tiny (1, L) rolls
            rs = pltpu.roll(row, s, axis=1)
            ok = (jnp.abs(cs - col) == dcol) & (jnp.abs(rs - row) == drow)
            out = out + jnp.where(ok, xs, 0.0)
        return out

    # Separable window sum: horizontal (within-row) pass, then vertical pass.
    sw = xf
    for d in range(1, p + 1):
        sw = add_taps(sw, xf, d, d, 0)
    sv = sw
    for d in range(1, p + 1):
        sv = add_taps(sv, sw, d * W, 0, d)

    # Residual add + exact count_include_pad=False normalisation.
    o_ref[...] = (xf + sv * inv).astype(o_ref.dtype)


def _row_tile(M: int, L: int) -> int:
    """Rows (flattened n*c images) per grid step for the (M, L) view."""
    if M <= 8:
        return M
    lane_pad = pl.cdiv(L, 128) * 128             # VMEM pads the lane dim to 128
    # ~4 MiB f32 per data slab (perf review): large DMAs, few 0.35 us grid steps;
    # the ~8 live slabs stay well inside v7x's 64 MiB physical VMEM.  (v5e/v6e with
    # 128 MiB VMEM could go bigger, but 4 MiB already sits at ~roofline.)
    rows = max(8, ((4 * 1024 * 1024) // (lane_pad * 4)) // 8 * 8)
    if M >= 16:
        # Keep >=2 "parallel" grid steps so both v7x TensorCores get work and the
        # BlockSpec pipeline can overlap DMA with compute.
        rows = min(rows, max(8, (M // 2) // 8 * 8))
    return min(rows, M)


@functools.partial(jax.jit, static_argnames=("ks",))
def poolformer_pallas(feat: jax.Array, ks: int = 3) -> jax.Array:
    """feat (N,C,H,W) -> feat + AvgPool2d(ks, stride=1, pad=ks//2, count_include_pad=False)(feat)."""
    assert ks % 2 == 1, "poolformer_pallas supports odd kernel sizes only"
    N, C, H, W = feat.shape
    p = ks // 2
    M, L = N * C, H * W

    # Free, contiguous collapse -- no transpose, no extra HBM pass.
    x2 = feat.reshape(M, L)

    # Tiny lane-dense resident constants: exact 1/(valid tap count) plus the col/row
    # index of every flattened pixel (used in-kernel to validate shifted taps).
    lin = jnp.arange(L, dtype=jnp.int32)
    row_i = lin // W
    col_i = lin - row_i * W
    rcnt = jnp.minimum(row_i + p, H - 1) - jnp.maximum(row_i - p, 0) + 1
    ccnt = jnp.minimum(col_i + p, W - 1) - jnp.maximum(col_i - p, 0) + 1
    inv = (1.0 / (rcnt * ccnt).astype(jnp.float32)).reshape(1, L)
    colf = col_i.astype(jnp.float32).reshape(1, L)
    rowf = row_i.astype(jnp.float32).reshape(1, L)

    Mt = _row_tile(M, L)
    grid = (pl.cdiv(M, Mt),)
    # TODO(synk): for extremely large H*W (~1M+ pixels) an additional halo'd L-tiling
    # axis would be needed to bound the minimum 8-row slab; not needed at
    # PoolFormer-scale feature maps.

    kernel = functools.partial(_poolformer_kernel, ks=ks, W=W)
    const_spec = pl.BlockSpec((1, L), lambda i: (0, 0))      # resident, loaded once
    out = pl.pallas_call(
        kernel,
        out_shape=jax.ShapeDtypeStruct((M, L), feat.dtype),
        grid_spec=pltpu.PrefetchScalarGridSpec(
            num_scalar_prefetch=0,
            grid=grid,
            in_specs=[
                const_spec, const_spec, const_spec,
                pl.BlockSpec((Mt, L), lambda i: (i, 0)),
            ],
            out_specs=pl.BlockSpec((Mt, L), lambda i: (i, 0)),
        ),
        compiler_params=pltpu.CompilerParams(
            dimension_semantics=("parallel",),
            vmem_limit_bytes=64 * 1024 * 1024,
        ),
    )(inv, colf, rowf, x2)

    return out.reshape(N, C, H, W)


def _poolformer_ref(feat: jax.Array, ks: int = 3) -> jax.Array:
    """Pure-JAX reference (AvgPool2d, count_include_pad=False) for verification."""
    p = ks // 2
    xf = feat.astype(jnp.float32)
    ssum = lax.reduce_window(
        xf, 0.0, lax.add,
        window_dimensions=(1, 1, ks, ks),
        window_strides=(1, 1, 1, 1),
        padding=((0, 0), (0, 0), (p, p), (p, p)))
    cnt = lax.reduce_window(
        jnp.ones_like(xf), 0.0, lax.add,
        window_dimensions=(1, 1, ks, ks),
        window_strides=(1, 1, 1, 1),
        padding=((0, 0), (0, 0), (p, p), (p, p)))
    return (xf + ssum / cnt).astype(feat.dtype)


if __name__ == "__main__":
    key = jax.random.PRNGKey(0)

    # Primary check: shapes implied by the module (small NCHW feature map).
    feat = jax.random.normal(key, (2, 4, 16, 16), dtype=jnp.float32)
    out = jax.block_until_ready(poolformer_pallas(feat, ks=3))
    ref = _poolformer_ref(feat, ks=3)
    assert out.shape == ref.shape and out.dtype == ref.dtype
    assert jnp.allclose(out, ref, atol=1e-5, rtol=1e-5), "mismatch vs reference (16x16)"

    # Second shape: H != W and a multi-step grid with a ragged row tile.
    feat2 = jax.random.normal(jax.random.PRNGKey(1), (3, 6, 8, 16), dtype=jnp.float32)
    out2 = jax.block_until_ready(poolformer_pallas(feat2, ks=3))
    ref2 = _poolformer_ref(feat2, ks=3)
    assert jnp.allclose(out2, ref2, atol=1e-5, rtol=1e-5), "mismatch vs reference (8x16)"

    print("KERNEL_OK")
</pallas_src>

<mosaic_0001>
module attributes {stable_mosaic.version = 11 : i64} {
  func.func @_poolformer_kernel(%arg0: i32, %arg1: memref<1x256xf32, #tpu.memory_space<vmem>>, %arg2: memref<1x256xf32, #tpu.memory_space<vmem>>, %arg3: memref<1x256xf32, #tpu.memory_space<vmem>>, %arg4: memref<8x256xf32, #tpu.memory_space<vmem>>, %arg5: memref<8x256xf32, #tpu.memory_space<vmem>>) attributes {dimension_semantics = [#tpu.dimension_semantics<parallel>], iteration_bounds = array<i64: 1>, scalar_prefetch = 0 : i64, scratch_operands = 0 : i64, tpu.core_type = #tpu.core_type<tc>, window_params = [{pipeline_mode = #tpu.pipeline_mode<synchronous>, transform_indices = @transform_0, window_bounds = array<i64: 1, 256>}, {pipeline_mode = #tpu.pipeline_mode<synchronous>, transform_indices = @transform_1, window_bounds = array<i64: 1, 256>}, {pipeline_mode = #tpu.pipeline_mode<synchronous>, transform_indices = @transform_2, window_bounds = array<i64: 1, 256>}, {transform_indices = @transform_3, window_bounds = array<i64: 8, 256>}, {transform_indices = @transform_4, window_bounds = array<i64: 8, 256>}]} {
    %c0 = arith.constant 0 : index
    %c0_0 = arith.constant 0 : index
    %0 = vector.load %arg4[%c0, %c0_0] : memref<8x256xf32, #tpu.memory_space<vmem>>, vector<8x256xf32>
    %c0_1 = arith.constant 0 : index
    %c0_2 = arith.constant 0 : index
    %1 = vector.load %arg1[%c0_1, %c0_2] : memref<1x256xf32, #tpu.memory_space<vmem>>, vector<1x256xf32>
    %c0_3 = arith.constant 0 : index
    %c0_4 = arith.constant 0 : index
    %2 = vector.load %arg2[%c0_3, %c0_4] : memref<1x256xf32, #tpu.memory_space<vmem>>, vector<1x256xf32>
    %c0_5 = arith.constant 0 : index
    %c0_6 = arith.constant 0 : index
    %3 = vector.load %arg3[%c0_5, %c0_6] : memref<1x256xf32, #tpu.memory_space<vmem>>, vector<1x256xf32>
    %c1_i32 = arith.constant 1 : i32
    %4 = tpu.dynamic_rotate %0 by %c1_i32 dim 1 : vector<8x256xf32>, i32 -> vector<8x256xf32>
    %c1_i32_7 = arith.constant 1 : i32
    %5 = tpu.dynamic_rotate %2 by %c1_i32_7 dim 1 : vector<1x256xf32>, i32 -> vector<1x256xf32>
    %c1_i32_8 = arith.constant 1 : i32
    %6 = tpu.dynamic_rotate %3 by %c1_i32_8 dim 1 : vector<1x256xf32>, i32 -> vector<1x256xf32>
    %7 = arith.subf %5, %2 : vector<1x256xf32>
    %8 = math.absf %7 : vector<1x256xf32>
    %cst = arith.constant 1.000000e+00 : f32
    %9 = vector.broadcast %cst : f32 to vector<1x256xf32>
    %10 = arith.cmpf oeq, %8, %9 : vector<1x256xf32>
    %11 = arith.subf %6, %3 : vector<1x256xf32>
    %12 = math.absf %11 : vector<1x256xf32>
    %cst_9 = arith.constant 0.000000e+00 : f32
    %13 = vector.broadcast %cst_9 : f32 to vector<1x256xf32>
    %14 = arith.cmpf oeq, %12, %13 : vector<1x256xf32>
    %15 = arith.andi %10, %14 : vector<1x256xi1>
    %cst_10 = arith.constant 0.000000e+00 : f32
    %16 = vector.shape_cast %15 : vector<1x256xi1> to vector<1x256xi1>
    %17 = vector.broadcast %16 : vector<1x256xi1> to vector<8x256xi1>
    %18 = vector.broadcast %cst_10 : f32 to vector<8x256xf32>
    %19 = arith.select %17, %4, %18 : vector<8x256xi1>, vector<8x256xf32>
    %20 = arith.addf %0, %19 : vector<8x256xf32>
    %c255_i32 = arith.constant 255 : i32
    %21 = tpu.dynamic_rotate %0 by %c255_i32 dim 1 : vector<8x256xf32>, i32 -> vector<8x256xf32>
    %c255_i32_11 = arith.constant 255 : i32
    %22 = tpu.dynamic_rotate %2 by %c255_i32_11 dim 1 : vector<1x256xf32>, i32 -> vector<1x256xf32>
    %c255_i32_12 = arith.constant 255 : i32
    %23 = tpu.dynamic_rotate %3 by %c255_i32_12 dim 1 : vector<1x256xf32>, i32 -> vector<1x256xf32>
    %24 = arith.subf %22, %2 : vector<1x256xf32>
    %25 = math.absf %24 : vector<1x256xf32>
    %cst_13 = arith.constant 1.000000e+00 : f32
    %26 = vector.broadcast %cst_13 : f32 to vector<1x256xf32>
    %27 = arith.cmpf oeq, %25, %26 : vector<1x256xf32>
    %28 = arith.subf %23, %3 : vector<1x256xf32>
    %29 = math.absf %28 : vector<1x256xf32>
    %cst_14 = arith.constant 0.000000e+00 : f32
    %30 = vector.broadcast %cst_14 : f32 to vector<1x256xf32>
    %31 = arith.cmpf oeq, %29, %30 : vector<1x256xf32>
    %32 = arith.andi %27, %31 : vector<1x256xi1>
    %cst_15 = arith.constant 0.000000e+00 : f32
    %33 = vector.shape_cast %32 : vector<1x256xi1> to vector<1x256xi1>
    %34 = vector.broadcast %33 : vector<1x256xi1> to vector<8x256xi1>
    %35 = vector.broadcast %cst_15 : f32 to vector<8x256xf32>
    %36 = arith.select %34, %21, %35 : vector<8x256xi1>, vector<8x256xf32>
    %37 = arith.addf %20, %36 : vector<8x256xf32>
    %c16_i32 = arith.constant 16 : i32
    %38 = tpu.dynamic_rotate %37 by %c16_i32 dim 1 : vector<8x256xf32>, i32 -> vector<8x256xf32>
    %c16_i32_16 = arith.constant 16 : i32
    %39 = tpu.dynamic_rotate %2 by %c16_i32_16 dim 1 : vector<1x256xf32>, i32 -> vector<1x256xf32>
    %c16_i32_17 = arith.constant 16 : i32
    %40 = tpu.dynamic_rotate %3 by %c16_i32_17 dim 1 : vector<1x256xf32>, i32 -> vector<1x256xf32>
    %41 = arith.subf %39, %2 : vector<1x256xf32>
    %42 = math.absf %41 : vector<1x256xf32>
    %cst_18 = arith.constant 0.000000e+00 : f32
    %43 = vector.broadcast %cst_18 : f32 to vector<1x256xf32>
    %44 = arith.cmpf oeq, %42, %43 : vector<1x256xf32>
    %45 = arith.subf %40, %3 : vector<1x256xf32>
    %46 = math.absf %45 : vector<1x256xf32>
    %cst_19 = arith.constant 1.000000e+00 : f32
    %47 = vector.broadcast %cst_19 : f32 to vector<1x256xf32>
    %48 = arith.cmpf oeq, %46, %47 : vector<1x256xf32>
    %49 = arith.andi %44, %48 : vector<1x256xi1>
    %cst_20 = arith.constant 0.000000e+00 : f32
    %50 = vector.shape_cast %49 : vector<1x256xi1> to vector<1x256xi1>
    %51 = vector.broadcast %50 : vector<1x256xi1> to vector<8x256xi1>
    %52 = vector.broadcast %cst_20 : f32 to vector<8x256xf32>
    %53 = arith.select %51, %38, %52 : vector<8x256xi1>, vector<8x256xf32>
    %54 = arith.addf %37, %53 : vector<8x256xf32>
    %c240_i32 = arith.constant 240 : i32
    %55 = tpu.dynamic_rotate %37 by %c240_i32 dim 1 : vector<8x256xf32>, i32 -> vector<8x256xf32>
    %c240_i32_21 = arith.constant 240 : i32
    %56 = tpu.dynamic_rotate %2 by %c240_i32_21 dim 1 : vector<1x256xf32>, i32 -> vector<1x256xf32>
    %c240_i32_22 = arith.constant 240 : i32
    %57 = tpu.dynamic_rotate %3 by %c240_i32_22 dim 1 : vector<1x256xf32>, i32 -> vector<1x256xf32>
    %58 = arith.subf %56, %2 : vector<1x256xf32>
    %59 = math.absf %58 : vector<1x256xf32>
    %cst_23 = arith.constant 0.000000e+00 : f32
    %60 = vector.broadcast %cst_23 : f32 to vector<1x256xf32>
    %61 = arith.cmpf oeq, %59, %60 : vector<1x256xf32>
    %62 = arith.subf %57, %3 : vector<1x256xf32>
    %63 = math.absf %62 : vector<1x256xf32>
    %cst_24 = arith.constant 1.000000e+00 : f32
    %64 = vector.broadcast %cst_24 : f32 to vector<1x256xf32>
    %65 = arith.cmpf oeq, %63, %64 : vector<1x256xf32>
    %66 = arith.andi %61, %65 : vector<1x256xi1>
    %cst_25 = arith.constant 0.000000e+00 : f32
    %67 = vector.shape_cast %66 : vector<1x256xi1> to vector<1x256xi1>
    %68 = vector.broadcast %67 : vector<1x256xi1> to vector<8x256xi1>
    %69 = vector.broadcast %cst_25 : f32 to vector<8x256xf32>
    %70 = arith.select %68, %55, %69 : vector<8x256xi1>, vector<8x256xf32>
    %71 = arith.addf %54, %70 : vector<8x256xf32>
    %72 = vector.broadcast %1 : vector<1x256xf32> to vector<8x256xf32>
    %73 = arith.mulf %71, %72 : vector<8x256xf32>
    %74 = arith.addf %0, %73 : vector<8x256xf32>
    %c0_26 = arith.constant 0 : index
    %c0_27 = arith.constant 0 : index
    %75 = vector.load %arg5[%c0_26, %c0_27] : memref<8x256xf32, #tpu.memory_space<vmem>>, vector<8x256xf32>
    tpu.vector_store %arg5[%c0_26, %c0_27], %74 {strides = array<i32>} : memref<8x256xf32, #tpu.memory_space<vmem>>, vector<8x256xf32>,
    return
  }
  func.func @transform_0(%arg0: i32) -> (i32, i32) {
    %c0_i32 = arith.constant 0 : i32
    %c0_i32_0 = arith.constant 0 : i32
    %c0_i32_1 = arith.constant 0 : i32
    return %c0_i32, %c0_i32_0 : i32, i32
  }
  func.func @transform_1(%arg0: i32) -> (i32, i32) {
    %c0_i32 = arith.constant 0 : i32
    %c0_i32_0 = arith.constant 0 : i32
    %c0_i32_1 = arith.constant 0 : i32
    return %c0_i32, %c0_i32_0 : i32, i32
  }
  func.func @transform_2(%arg0: i32) -> (i32, i32) {
    %c0_i32 = arith.constant 0 : i32
    %c0_i32_0 = arith.constant 0 : i32
    %c0_i32_1 = arith.constant 0 : i32
    return %c0_i32, %c0_i32_0 : i32, i32
  }
  func.func @transform_3(%arg0: i32) -> (i32, i32) {
    %c0_i32 = arith.constant 0 : i32
    %c0_i32_0 = arith.constant 0 : i32
    return %arg0, %c0_i32 : i32, i32
  }
  func.func @transform_4(%arg0: i32) -> (i32, i32) {
    %c0_i32 = arith.constant 0 : i32
    %c0_i32_0 = arith.constant 0 : i32
    return %arg0, %c0_i32 : i32, i32
  }
}

</mosaic_0001>

<bundles_post_ra>
// kernel: poolformer_pallas.1
= control target key start
LH: loop header
LB: loop body
LE: loop exit
PB: predicated region body
PF: predicated region fallthrough
CT: control target
= control target key end

     0   :  { %v26_v0 = vlaneseq  ;;  %s268_s19 = smov 1   ;;  %s270_s23 = smov 16   ;;  %v272_v37 = vmov 0   ;;  %s473_s2 = inlined_call_operand.vmem [shape: f32[1,256], index: 2, kind: input, shape index: {}]   ;;  %s474_s1 = inlined_call_operand.vmem [shape: f32[1,256], index: 1, kind: input, shape index: {}]   ;;  %s475_s3 = inlined_call_operand.vmem [shape: f32[8,256], index: 3, kind: input, shape index: {}]   ;;  %s476_s0 = inlined_call_operand.vmem [shape: f32[1,256], index: 0, kind: input, shape index: {}]   ;;  %s477_s4 = inlined_call_operand.vmem [shape: f32[8,256], index: 4, kind: output, shape index: {}]  }
   0x1   :  { %v21_v2 = vld [vmem:[%s473_s2] sm:$0x3]  ;;  %v331_v10 = vld [vmem:[%s475_s3 + $0x8] sm:$0xff] }
   0x2   :  { %v33_v1 = vshrl.u32 %v26_v0, 7  ;;  %v20_v3 = vld [vmem:[%s474_s1] sm:$0x3]  ;;  %s269_s1 = smov 127   ;;  %v358_v12 = vand.u32 127, %v26_v0 }
   0x3   :  { %v336_v11 = vld [vmem:[%s475_s3] sm:$0xff]  ;;  %s271_s3 = smov 112  }
   0x4   :  { %v304_v4 = vsub.s32 0, %v33_v1  ;;  %v306_v5 = vsub.s32 1, %v33_v1  ;;  %vm28_vm0 = vcmp.lt.s32.totalorder %v358_v12, 1  ;;  %vm99_vm1 = vcmp.lt.s32.totalorder %v358_v12, 127 }
   0x6   :  { %v309_v6 = vrot.slane %v21_v2, %v304_v4  ;;  %v312_v7 = vrot.slane %v20_v3, %v304_v4  ;;  %v317_v8 = vrot.slane %v21_v2, %v306_v5  ;;  %v320_v9 = vrot.slane %v20_v3, %v306_v5 }
   0x8   :  { %59 = vrot.lane.b32.xlu1 %v309_v6, %s268_s19  ;;  %42 = vrot.lane.b32.xlu0 %v312_v7, %s268_s19 }
   0xc   :  { %61 = vrot.lane.b32.xlu1 %v317_v8, %s268_s19  ;;  %44 = vrot.lane.b32.xlu0 %v320_v9, %s268_s19 }
  0x10   :  { %104 = vrot.lane.b32.xlu1 %v320_v9, %s269_s1  ;;  %102 = vrot.lane.b32.xlu0 %v312_v7, %s269_s1 }
  0x14   :  { %110 = vrot.lane.b32.xlu1 %v317_v8, %s269_s1  ;;  %108 = vrot.lane.b32.xlu0 %v309_v6, %s269_s1 }
  0x18   :  { %24 = vrot.lane.b32.xlu1 %v331_v10, %s268_s19  ;;  %22 = vrot.lane.b32.xlu0 %v336_v11, %s268_s19 }
  0x1c   :  { %97 = vrot.lane.b32.xlu1 %v331_v10, %s269_s1  ;;  %95 = vrot.lane.b32.xlu0 %v336_v11, %s269_s1 }
  0x20   :  { %153 = vrot.lane.b32.xlu1 %v320_v9, %s270_s23  ;;  %151 = vrot.lane.b32.xlu0 %v312_v7, %s270_s23 }
  0x24   :  { %159 = vrot.lane.b32.xlu1 %v317_v8, %s270_s23  ;;  %157 = vrot.lane.b32.xlu0 %v309_v6, %s270_s23 }
  0x28   :  { %202 = vrot.lane.b32.xlu1 %v320_v9, %s271_s3  ;;  %200 = vrot.lane.b32.xlu0 %v312_v7, %s271_s3 }
  0x2c   :  { %208 = vrot.lane.b32.xlu1 %v317_v8, %s271_s3  ;;  %206 = vrot.lane.b32.xlu0 %v309_v6, %s271_s3 }
  0x7a   :  { %v60_v13 = vpop.permute.xlu1 %59  ;;  %v43_v14 = vpop.permute.xlu0 %42 }
  0x7e   :  { %v62_v15 = vpop.permute.xlu1 %61  ;;  %v45_v16 = vpop.permute.xlu0 %44 }
  0x7f   :  { %v63_v17 = vsel %vm28_vm0, %v60_v13, %v62_v15  ;;  %v64_v18 = vsel %vm28_vm0, %v62_v15, %v60_v13  ;;  %v46_v19 = vsel %vm28_vm0, %v43_v14, %v45_v16  ;;  %v47_v20 = vsel %vm28_vm0, %v45_v16, %v43_v14 }
  0x80   :  { %v71_v21 = vsub.f32 %v64_v18, %v309_v6  ;;  %v72_v22 = vsub.f32 %v63_v17, %v317_v8  ;;  %v65_v23 = vsub.f32 %v47_v20, %v312_v7  ;;  %v66_v24 = vsub.f32 %v46_v19, %v320_v9 }
  0x82   :  { %v73_v25 = vand.u32 2147483647, %v71_v21  ;;  %v74_v26 = vand.u32 2147483647, %v72_v22  ;;  %v67_v27 = vand.u32 2147483647, %v65_v23  ;;  %v105_v28 = vpop.permute.xlu1 %104  ;;  %v103_v29 = vpop.permute.xlu0 %102 }
  0x83   :  { %v68_v30 = vand.u32 2147483647, %v66_v24  ;;  %v106_v31 = vsel %vm99_vm1, %v103_v29, %v105_v28  ;;  %v107_v32 = vsel %vm99_vm1, %v105_v28, %v103_v29 }
  0x84   :  { %vm75_vm2 = vcmp.eq.f32.partialorder %v73_v25, 0.0  ;;  %vm76_vm3 = vcmp.eq.f32.partialorder %v74_v26, 0.0  ;;  %vm69_vm4 = vcmp.eq.f32.partialorder %v67_v27, 1.0  ;;  %v114_v33 = vsub.f32 %v106_v31, %v312_v7 }
  0x85   :  { %vm70_vm5 = vcmp.eq.f32.partialorder %v68_v30, 1.0  ;;  %vm77_vm6 = vmand %vm69_vm4, %vm75_vm2  ;;  %v115_v34 = vsub.f32 %v107_v32, %v320_v9 }
  0x86   :  { %vm78_vm7 = vmand %vm70_vm5, %vm76_vm3  ;;  %v111_v35 = vpop.permute.xlu1 %110  ;;  %v109_v36 = vpop.permute.xlu0 %108  ;;  %v79_v38 = vsel %vm77_vm6, 1, %v272_v37  ;;  %v116_v42 = vand.u32 2147483647, %v114_v33 }
  0x87   :  { %v112_v39 = vsel %vm99_vm1, %v109_v36, %v111_v35  ;;  %v113_v40 = vsel %vm99_vm1, %v111_v35, %v109_v36  ;;  %v80_v41 = vsel %vm78_vm7, 1, %v272_v37  ;;  %v117_v45 = vand.u32 2147483647, %v115_v34 }
  0x88   :  { %v120_v43 = vsub.f32 %v112_v39, %v309_v6  ;;  %v121_v44 = vsub.f32 %v113_v40, %v317_v8  ;;  %v84_v46 = vrot.slane %v79_v38, %v304_v4  ;;  %v88_v50 = vrot.slane %v80_v41, %v304_v4 }
  0x89   :  { %vm118_vm8 = vcmp.eq.f32.partialorder %v116_v42, 1.0  ;;  %vm119_vm11 = vcmp.eq.f32.partialorder %v117_v45, 1.0 }
  0x8a   :  { %v122_v47 = vand.u32 2147483647, %v120_v43  ;;  %v123_v48 = vand.u32 2147483647, %v121_v44  ;;  %v25_v49 = vpop.permute.xlu1 %24  ;;  %v23_v51 = vpop.permute.xlu0 %22  ;;  %vm89_vm13 = vcmp.eq.s32.totalorder %v84_v46, 1  ;;  %vm90_vm15 = vcmp.eq.s32.totalorder %v88_v50, 1 }
  0x8b   :  { %v30_v52 = vsel %vm28_vm0, %v25_v49, %v23_v51  ;;  %v29_v53 = vsel %vm28_vm0, %v23_v51, %v25_v49  ;;  %vm148_vm0 = vcmp.lt.s32.totalorder %v358_v12, 16 }
  0x8c   :  { %vm124_vm9 = vcmp.eq.f32.partialorder %v122_v47, 0.0  ;;  %vm125_vm10 = vcmp.eq.f32.partialorder %v123_v48, 0.0  ;;  %v91_v54 = vsel %vm89_vm13, %v30_v52, 0.0  ;;  %v92_v58 = vsel %vm90_vm15, %v29_v53, 0.0 }
  0x8d   :  { %vm126_vm12 = vmand %vm118_vm8, %vm124_vm9  ;;  %v93_v0 = vadd.f32 %v91_v54, %v336_v11  ;;  %v94_v1 = vadd.f32 %v92_v58, %v331_v10 }
  0x8e   :  { %vm127_vm14 = vmand %vm119_vm11, %vm125_vm10  ;;  %v98_v55 = vpop.permute.xlu1 %97  ;;  %v128_v56 = vsel %vm126_vm12, 1, %v272_v37  ;;  %v96_v57 = vpop.permute.xlu0 %95 }
  0x8f   :  { %v129_v59 = vsel %vm127_vm14, 1, %v272_v37  ;;  %v133_v60 = vrot.slane %v128_v56, %v304_v4  ;;  %v100_v61 = vsel %vm99_vm1, %v96_v57, %v98_v55  ;;  %v101_v63 = vsel %vm99_vm1, %v98_v55, %v96_v57 }
  0x90   :  { %v137_v62 = vrot.slane %v129_v59, %v304_v4  ;;  %vm197_vm1 = vcmp.lt.s32.totalorder %v358_v12, 112 }
  0x91   :  { %vm138_vm2 = vcmp.eq.s32.totalorder %v133_v60, 1 }
  0x92   :  { %vm139_vm3 = vcmp.eq.s32.totalorder %v137_v62, 1  ;;  %v140_v2 = vsel %vm138_vm2, %v100_v61, 0.0  ;;  %v154_v3 = vpop.permute.xlu1 %153  ;;  %v152_v13 = vpop.permute.xlu0 %151 }
  0x93   :  { %v141_v14 = vsel %vm139_vm3, %v101_v63, 0.0  ;;  %v405_v15 = vadd.f32 %v140_v2, %v93_v0  ;;  %v155_v16 = vsel %vm148_vm0, %v152_v13, %v154_v3  ;;  %v156_v17 = vsel %vm148_vm0, %v154_v3, %v152_v13 }
  0x94   :  { %v411_v18 = vadd.f32 %v141_v14, %v94_v1  ;;  %v163_v19 = vsub.f32 %v156_v17, %v312_v7  ;;  %v164_v20 = vsub.f32 %v155_v16, %v320_v9 }
  0x95   :  { %144 = vrot.lane.b32.xlu0 %v405_v15, %s270_s23 }
  0x96   :  { %146 = vrot.lane.b32.xlu1 %v411_v18, %s270_s23  ;;  %v165_v21 = vand.u32 2147483647, %v163_v19  ;;  %v160_v22 = vpop.permute.xlu1 %159  ;;  %v158_v23 = vpop.permute.xlu0 %157  ;;  %v166_v24 = vand.u32 2147483647, %v164_v20 }
  0x97   :  { %v161_v25 = vsel %vm148_vm0, %v158_v23, %v160_v22  ;;  %v162_v26 = vsel %vm148_vm0, %v160_v22, %v158_v23 }
  0x98   :  { %v169_v27 = vsub.f32 %v162_v26, %v309_v6  ;;  %v170_v28 = vsub.f32 %v161_v25, %v317_v8  ;;  %vm167_vm4 = vcmp.eq.f32.partialorder %v165_v21, 0.0  ;;  %vm168_vm5 = vcmp.eq.f32.partialorder %v166_v24, 0.0 }
  0x99   :  { %193 = vrot.lane.b32.xlu0 %v405_v15, %s271_s3 }
  0x9a   :  { %195 = vrot.lane.b32.xlu1 %v411_v18, %s271_s3  ;;  %v171_v29 = vand.u32 2147483647, %v169_v27  ;;  %v172_v30 = vand.u32 2147483647, %v170_v28  ;;  %v203_v31 = vpop.permute.xlu1 %202  ;;  %v201_v32 = vpop.permute.xlu0 %200 }
  0x9b   :  { %v204_v33 = vsel %vm197_vm1, %v201_v32, %v203_v31  ;;  %v205_v34 = vsel %vm197_vm1, %v203_v31, %v201_v32 }
  0x9c   :  { %vm173_vm6 = vcmp.eq.f32.partialorder %v171_v29, 1.0  ;;  %vm174_vm7 = vcmp.eq.f32.partialorder %v172_v30, 1.0  ;;  %v212_v35 = vsub.f32 %v204_v33, %v312_v7  ;;  %v213_v36 = vsub.f32 %v205_v34, %v320_v9 }
  0x9d   :  { %vm175_vm8 = vmand %vm167_vm4, %vm173_vm6 }
  0x9e   :  { %vm176_vm9 = vmand %vm168_vm5, %vm174_vm7  ;;  %v214_v38 = vand.u32 2147483647, %v212_v35  ;;  %v209_v39 = vpop.permute.xlu1 %208  ;;  %v207_v40 = vpop.permute.xlu0 %206  ;;  %v177_v41 = vsel %vm175_vm8, 1, %v272_v37  ;;  %v215_v42 = vand.u32 2147483647, %v213_v36 }
  0x9f   :  { %v210_v43 = vsel %vm197_vm1, %v207_v40, %v209_v39  ;;  %v211_v44 = vsel %vm197_vm1, %v209_v39, %v207_v40  ;;  %v178_v45 = vsel %vm176_vm9, 1, %v272_v37  ;;  %v182_v50 = vrot.slane %v177_v41, %v304_v4 }
  0xa0   :  { %v218_v7 = vsub.f32 %v210_v43, %v309_v6  ;;  %v219_v9 = vsub.f32 %v211_v44, %v317_v8  ;;  %vm216_vm10 = vcmp.eq.f32.partialorder %v214_v38, 0.0  ;;  %vm217_vm11 = vcmp.eq.f32.partialorder %v215_v42, 0.0 }
  0xa1   :  { %v186_v51 = vrot.slane %v178_v45, %v304_v4  ;;  %vm187_vm2 = vcmp.eq.s32.totalorder %v182_v50, 1 }
  0xa2   :  { %v220_v46 = vand.u32 2147483647, %v218_v7  ;;  %v221_v47 = vand.u32 2147483647, %v219_v9 }
  0xa3   :  { %vm188_vm3 = vcmp.eq.s32.totalorder %v186_v51, 1 }
  0xa4   :  { %vm222_vm12 = vcmp.eq.f32.partialorder %v220_v46, 1.0  ;;  %vm223_vm13 = vcmp.eq.f32.partialorder %v221_v47, 1.0 }
  0xa5   :  { %vm224_vm14 = vmand %vm216_vm10, %vm222_vm12 }
  0xa6   :  { %vm225_vm15 = vmand %vm217_vm11, %vm223_vm13  ;;  %v226_v48 = vsel %vm224_vm14, 1, %v272_v37 }
  0xa7   :  { %v227_v49 = vsel %vm225_vm15, 1, %v272_v37  ;;  %v231_v8 = vrot.slane %v226_v48, %v304_v4  ;;  %v19_v37 = vld [vmem:[%s476_s0] sm:$0x3] }
  0xa8   :  { %v235_v53 = vrot.slane %v227_v49, %v304_v4  ;;  %v246_v60 = vrot.slane %v19_v37, %v304_v4  ;;  %v250_v61 = vrot.slane %v19_v37, %v306_v5 }
  0xa9   :  { %vm236_vm4 = vcmp.eq.s32.totalorder %v231_v8, 1 }
  0xaa   :  { %vm237_vm5 = vcmp.eq.s32.totalorder %v235_v53, 1 }
 0x107   :  { %v145_v52 = vpop.permute.xlu0 %144 }
 0x108   :  { %v147_v6 = vpop.permute.xlu1 %146 }
 0x109   :  { %v149_v54 = vsel %vm148_vm0, %v145_v52, %v147_v6  ;;  %v150_v55 = vsel %vm148_vm0, %v147_v6, %v145_v52 }
 0x10a   :  { %v189_v56 = vsel %vm187_vm2, %v150_v55, 0.0  ;;  %v190_v57 = vsel %vm188_vm3, %v149_v54, 0.0 }
 0x10b   :  { %v194_v58 = vpop.permute.xlu0 %193  ;;  %v191_v62 = vadd.f32 %v189_v56, %v405_v15  ;;  %v192_v63 = vadd.f32 %v190_v57, %v411_v18 }
 0x10c   :  { %v196_v59 = vpop.permute.xlu1 %195 }
 0x10d   :  { %v198_v0 = vsel %vm197_vm1, %v194_v58, %v196_v59  ;;  %v199_v1 = vsel %vm197_vm1, %v196_v59, %v194_v58 }
 0x10e   :  { %v238_v2 = vsel %vm236_vm4, %v198_v0, 0.0  ;;  %v239_v3 = vsel %vm237_vm5, %v199_v1, 0.0 }
 0x10f   :  { %v240_v13 = vadd.f32 %v238_v2, %v191_v62  ;;  %v241_v14 = vadd.f32 %v239_v3, %v192_v63 }
 0x111   :  { %v253_v16 = vmul.f32 %v246_v60, %v240_v13  ;;  %v254_v17 = vmul.f32 %v250_v61, %v241_v14 }
 0x113   :  { %v255_v4 = vadd.f32 %v253_v16, %v336_v11  ;;  %v256_v5 = vadd.f32 %v254_v17, %v331_v10 }
 0x115   :  { %257 = vst [vmem:[%s477_s4] sm:$0xff] %v255_v4  ;;  %258 = vst [vmem:[%s477_s4 + $0x8] sm:$0xff] %v256_v5 }

</bundles_post_ra>
